<compile_context>
chip_gen: v7x
topology: tpu7x:2x2x1
jax: 0.10.0
libtpu: 0.0.40
codegen_flags: <defaults>
</compile_context>

<pallas_src>
import math
from functools import partial

import jax
import jax.numpy as jnp
from jax import lax
from jax.experimental import pallas as pl
from jax.experimental.pallas import tpu as pltpu


# ---------------------------------------------------------------------------
# Tiled linear:  y = x @ w_t + b      (x: (M, K), w_t: (K, N), b: (N,))
# ---------------------------------------------------------------------------
def _linear_kernel(x_ref, w_ref, b_ref, o_ref, acc_ref):
    k = pl.program_id(2)

    @pl.when(k == 0)
    def _():
        acc_ref[...] = jnp.zeros_like(acc_ref)

    acc_ref[...] += jnp.dot(x_ref[...], w_ref[...],
                            preferred_element_type=jnp.float32)

    @pl.when(k == pl.num_programs(2) - 1)
    def _():
        o_ref[...] = (acc_ref[...] + b_ref[...]).astype(o_ref.dtype)


def _pick_tile(dim, candidates):
    # Tile must be a multiple of (8 sublane / 128 lane) or the full extent.
    for c in candidates:
        if c <= dim and dim % c == 0:
            return c
    return dim  # fall back to the full (untiled) extent


def pallas_linear(x2d, w_t, b):
    """x2d: (M, K), w_t: (K, N), b: (N,)  ->  (M, N) float32."""
    M, K = x2d.shape
    N = w_t.shape[1]
    tm = _pick_tile(M, (256, 128, 64, 32, 16, 8))
    tn = _pick_tile(N, (512, 256, 128))
    tk = _pick_tile(K, (1024, 512, 256, 128))
    grid = (M // tm, N // tn, K // tk)

    return pl.pallas_call(
        _linear_kernel,
        out_shape=jax.ShapeDtypeStruct((M, N), jnp.float32),
        grid_spec=pltpu.PrefetchScalarGridSpec(
            num_scalar_prefetch=0,
            grid=grid,
            in_specs=[
                pl.BlockSpec((tm, tk), lambda i, j, k: (i, k)),
                pl.BlockSpec((tk, tn), lambda i, j, k: (k, j)),
                pl.BlockSpec((1, tn), lambda i, j, k: (0, j)),
            ],
            out_specs=pl.BlockSpec((tm, tn), lambda i, j, k: (i, j)),
            scratch_shapes=[pltpu.VMEM((tm, tn), jnp.float32)],
        ),
        compiler_params=pltpu.CompilerParams(
            dimension_semantics=("parallel", "parallel", "arbitrary")),
    )(x2d, w_t, b.reshape(1, N))


# ---------------------------------------------------------------------------
# Attention kernel: one batch element (all heads) per grid step.
# ---------------------------------------------------------------------------
def _attention_kernel(q_ref, k_ref, v_ref, o_ref, *, num_heads, scale):
    # Blocks are (1, T, C); heads are contiguous Dh-wide lane slices of C,
    # so head split/merge happens entirely in VMEM (no HBM transposes).
    _, T, C = q_ref.shape
    Dh = C // num_heads

    q_all = q_ref[0] * scale      # scale folded into q: O(T*C) not O(H*T*T)
    k_all = k_ref[0]
    v_all = v_ref[0]

    heads_out = []
    for h in range(num_heads):    # static unroll; H is small and static
        lo, hi = h * Dh, (h + 1) * Dh
        q = q_all[:, lo:hi]       # (T, Dh)
        k = k_all[:, lo:hi]
        v = v_all[:, lo:hi]
        # Q @ K^T without materializing K^T: contract Dh of both operands.
        s = lax.dot_general(q, k, (((1,), (1,)), ((), ())),
                            preferred_element_type=jnp.float32)   # (T, T)
        s = s - jnp.max(s, axis=-1, keepdims=True)
        e = jnp.exp(s)
        p = e * pl.reciprocal(jnp.sum(e, axis=-1, keepdims=True), approx=True)
        heads_out.append(jnp.dot(p, v, preferred_element_type=jnp.float32))

    # Single lane-dense (T, C) store; this is also the merged-heads layout.
    o_ref[0] = jnp.concatenate(heads_out, axis=-1)
    # TODO(synk): additive mask path (mask==1 -> -inf) not wired in; only the
    #             mask=None forward path is implemented.
    # TODO(synk): for long sequences, tile the KV axis with an online-softmax
    #             (flash) accumulator so the (T, T) score block stays within
    #             VMEM (mandatory on v7x's 64 MiB VMEM); unnecessary here.


# ---------------------------------------------------------------------------
# Wrapper: MultiHeadAttention.forward (mask=None path)
# ---------------------------------------------------------------------------
def multi_head_attention(Q, K, V, params, num_heads):
    B, T, C = Q.shape
    assert C % num_heads == 0

    # QKV projections (tiled Pallas matmuls).
    q = pallas_linear(Q.reshape(B * T, C), params["wq"].T, params["bq"])
    k = pallas_linear(K.reshape(B * T, C), params["wk"].T, params["bk"])
    v = pallas_linear(V.reshape(B * T, C), params["wv"].T, params["bv"])

    # (B*T, C) -> (B, T, C) is a free, contiguous reshape: no transposes or
    # extra HBM passes between the projection and attention kernels.
    qh = q.reshape(B, T, C)
    kh = k.reshape(B, T, C)
    vh = v.reshape(B, T, C)

    # Reference bug reproduced: scale by sqrt(K.size()[2]) == sqrt(T).
    scale = 1.0 / math.sqrt(float(T))

    attn = pl.pallas_call(
        partial(_attention_kernel, num_heads=num_heads, scale=scale),
        out_shape=jax.ShapeDtypeStruct((B, T, C), jnp.float32),
        grid=(B,),
        in_specs=[
            pl.BlockSpec((1, T, C), lambda b: (b, 0, 0)),
            pl.BlockSpec((1, T, C), lambda b: (b, 0, 0)),
            pl.BlockSpec((1, T, C), lambda b: (b, 0, 0)),
        ],
        out_specs=pl.BlockSpec((1, T, C), lambda b: (b, 0, 0)),
        compiler_params=pltpu.CompilerParams(dimension_semantics=("parallel",)),
    )(qh, kh, vh)

    # Output projection; (B, T, C) -> (B*T, C) is again a free reshape.
    out = pallas_linear(attn.reshape(B * T, C), params["wo"].T, params["bo"])
    return out.reshape(B, T, C)


# ---------------------------------------------------------------------------
# Pure-JAX reference for verification
# ---------------------------------------------------------------------------
def reference_mha(Q, K, V, params, num_heads):
    B, T, C = Q.shape
    Dh = C // num_heads

    def lin(x, w, b):
        return x @ w.T + b

    def split(x):
        return x.reshape(B, T, num_heads, Dh).transpose(0, 2, 1, 3)

    q = split(lin(Q, params["wq"], params["bq"]))
    k = split(lin(K, params["wk"], params["bk"]))
    v = split(lin(V, params["wv"], params["bv"]))
    score = q @ jnp.swapaxes(k, -2, -1)
    scaled = score / jnp.sqrt(jnp.float32(T))       # reference uses sqrt(T)
    p = jax.nn.softmax(scaled, axis=-1)
    x = p @ v
    x = x.transpose(0, 2, 1, 3).reshape(B, T, C)
    return lin(x, params["wo"], params["bo"])


# ---------------------------------------------------------------------------
def init_params(key, embedding_dim):
    # nn.Linear default init: U(-1/sqrt(in), 1/sqrt(in)) for weight and bias.
    bound = 1.0 / math.sqrt(embedding_dim)
    keys = jax.random.split(key, 8)
    names = ["wq", "bq", "wk", "bk", "wv", "bv", "wo", "bo"]
    params = {}
    for i, name in enumerate(names):
        shape = (
            (embedding_dim, embedding_dim) if name.startswith("w") else (embedding_dim,)
        )
        params[name] = jax.random.uniform(
            keys[i], shape, dtype=jnp.float32, minval=-bound, maxval=bound
        )
    return params


if __name__ == "__main__":
    B, T, C, H = 2, 16, 32, 4  # batch, seq, embedding_dim, num_heads

    root = jax.random.PRNGKey(0)
    kq, kk, kv, kp = jax.random.split(root, 4)
    Q = jax.random.normal(kq, (B, T, C), dtype=jnp.float32)
    K = jax.random.normal(kk, (B, T, C), dtype=jnp.float32)
    V = jax.random.normal(kv, (B, T, C), dtype=jnp.float32)
    params = init_params(kp, C)

    out = multi_head_attention(Q, K, V, params, H)
    out = jax.block_until_ready(out)

    ref = reference_mha(Q, K, V, params, H)
    assert out.shape == (B, T, C)
    # 1e-3 tolerance absorbs the approx (EUP) reciprocal in the softmax while
    # still catching any structural error (wrong head merge / scale / bias).
    assert jnp.allclose(out, ref, atol=1e-3, rtol=1e-3), "mismatch vs reference"

    print("KERNEL_OK")
</pallas_src>

<mosaic_0001>
module attributes {stable_mosaic.version = 11 : i64} {
  func.func @_linear_kernel(%arg0: i32, %arg1: i32, %arg2: i32, %arg3: memref<32x32xf32, #tpu.memory_space<vmem>>, %arg4: memref<32x32xf32, #tpu.memory_space<vmem>>, %arg5: memref<1x32xf32, #tpu.memory_space<vmem>>, %arg6: memref<32x32xf32, #tpu.memory_space<vmem>>, %arg7: memref<32x32xf32, #tpu.memory_space<vmem>>) attributes {dimension_semantics = [#tpu.dimension_semantics<parallel>, #tpu.dimension_semantics<parallel>, #tpu.dimension_semantics<arbitrary>], iteration_bounds = array<i64: 1, 1, 1>, scalar_prefetch = 0 : i64, scratch_operands = 1 : i64, tpu.core_type = #tpu.core_type<tc>, window_params = [{transform_indices = @transform_0, window_bounds = array<i64: 32, 32>}, {transform_indices = @transform_1, window_bounds = array<i64: 32, 32>}, {transform_indices = @transform_2, window_bounds = array<i64: 1, 32>}, {transform_indices = @transform_3, window_bounds = array<i64: 32, 32>}]} {
    %c0_i32 = arith.constant 0 : i32
    %0 = arith.cmpi eq, %arg2, %c0_i32 : i32
    %1 = arith.extui %0 : i1 to i32
    %c0_i32_0 = arith.constant 0 : i32
    %2 = arith.cmpi ne, %1, %c0_i32_0 : i32
    scf.if %2 {
      %cst_10 = arith.constant 0.000000e+00 : f32
      %12 = vector.broadcast %cst_10 : f32 to vector<32x32xf32>
      %c0_11 = arith.constant 0 : index
      %c0_12 = arith.constant 0 : index
      %13 = vector.load %arg7[%c0_11, %c0_12] : memref<32x32xf32, #tpu.memory_space<vmem>>, vector<32x32xf32>
      tpu.vector_store %arg7[%c0_11, %c0_12], %12 {strides = array<i32>} : memref<32x32xf32, #tpu.memory_space<vmem>>, vector<32x32xf32>,
    } else {
    }
    %c0 = arith.constant 0 : index
    %c0_1 = arith.constant 0 : index
    %3 = vector.load %arg7[%c0, %c0_1] : memref<32x32xf32, #tpu.memory_space<vmem>>, vector<32x32xf32>
    %c0_2 = arith.constant 0 : index
    %c0_3 = arith.constant 0 : index
    %4 = vector.load %arg3[%c0_2, %c0_3] : memref<32x32xf32, #tpu.memory_space<vmem>>, vector<32x32xf32>
    %c0_4 = arith.constant 0 : index
    %c0_5 = arith.constant 0 : index
    %5 = vector.load %arg4[%c0_4, %c0_5] : memref<32x32xf32, #tpu.memory_space<vmem>>, vector<32x32xf32>
    %cst = arith.constant dense<0.000000e+00> : vector<32x32xf32>
    %6 = tpu.matmul %4, %5, %cst {dimension_numbers = #tpu.dot_dimension_numbers<[1], [0], [0], [1], [0, 0, 1, 1], [], []>} : vector<32x32xf32>, vector<32x32xf32>, vector<32x32xf32> -> vector<32x32xf32>
    %7 = arith.addf %3, %6 : vector<32x32xf32>
    %c0_6 = arith.constant 0 : index
    %c0_7 = arith.constant 0 : index
    %8 = vector.load %arg7[%c0_6, %c0_7] : memref<32x32xf32, #tpu.memory_space<vmem>>, vector<32x32xf32>
    tpu.vector_store %arg7[%c0_6, %c0_7], %7 {strides = array<i32>} : memref<32x32xf32, #tpu.memory_space<vmem>>, vector<32x32xf32>,
    %c0_i32_8 = arith.constant 0 : i32
    %9 = arith.cmpi eq, %arg2, %c0_i32_8 : i32
    %10 = arith.extui %9 : i1 to i32
    %c0_i32_9 = arith.constant 0 : i32
    %11 = arith.cmpi ne, %10, %c0_i32_9 : i32
    scf.if %11 {
      %c0_10 = arith.constant 0 : index
      %c0_11 = arith.constant 0 : index
      %12 = vector.load %arg7[%c0_10, %c0_11] : memref<32x32xf32, #tpu.memory_space<vmem>>, vector<32x32xf32>
      %c0_12 = arith.constant 0 : index
      %c0_13 = arith.constant 0 : index
      %13 = vector.load %arg5[%c0_12, %c0_13] : memref<1x32xf32, #tpu.memory_space<vmem>>, vector<1x32xf32>
      %14 = vector.broadcast %13 : vector<1x32xf32> to vector<32x32xf32>
      %15 = arith.addf %12, %14 : vector<32x32xf32>
      %c0_14 = arith.constant 0 : index
      %c0_15 = arith.constant 0 : index
      %16 = vector.load %arg6[%c0_14, %c0_15] : memref<32x32xf32, #tpu.memory_space<vmem>>, vector<32x32xf32>
      tpu.vector_store %arg6[%c0_14, %c0_15], %15 {strides = array<i32>} : memref<32x32xf32, #tpu.memory_space<vmem>>, vector<32x32xf32>,
    } else {
    }
    return
  }
  func.func @transform_0(%arg0: i32, %arg1: i32, %arg2: i32) -> (i32, i32) {
    %c0_i32 = arith.constant 0 : i32
    return %arg0, %arg2 : i32, i32
  }
  func.func @transform_1(%arg0: i32, %arg1: i32, %arg2: i32) -> (i32, i32) {
    %c0_i32 = arith.constant 0 : i32
    return %arg2, %arg1 : i32, i32
  }
  func.func @transform_2(%arg0: i32, %arg1: i32, %arg2: i32) -> (i32, i32) {
    %c0_i32 = arith.constant 0 : i32
    %c0_i32_0 = arith.constant 0 : i32
    return %c0_i32, %arg1 : i32, i32
  }
  func.func @transform_3(%arg0: i32, %arg1: i32, %arg2: i32) -> (i32, i32) {
    %c0_i32 = arith.constant 0 : i32
    return %arg0, %arg1 : i32, i32
  }
}

</mosaic_0001>

<bundles_post_ra>
// kernel: tpu_custom_call.1
= control target key start
LH: loop header
LB: loop body
LE: loop exit
PB: predicated region body
PF: predicated region fallthrough
CT: control target
= control target key end

     0   :  { %8 = vsyncpa [#allocation4], 0  ;;  %s417_s0 = inlined_call_operand.hbm [shape: f32[32,32], index: 0, kind: input, shape index: {}]   ;;  %s418_s1 = inlined_call_operand.hbm [shape: f32[32,32], index: 1, kind: input, shape index: {}]   ;;  %s419_s2 = inlined_call_operand.vmem [shape: f32[1,32], index: 2, kind: input, shape index: {}]   ;;  %s420_s3 = inlined_call_operand.hbm [shape: f32[32,32], index: 3, kind: output, shape index: {}]  }
   0x1   :  { %9 = vsyncpa [#allocation7], 0 }
   0x2   :  { %10 = vsyncpa [#allocation5], 0  ;;  %s327_s12 = smov [#allocation3]   ;;  %s255_s16 = scalar_lea.hbm %s417_s0, 512 }
   0x3   :  { %s16_s13 = sshll.u32 %s327_s12, 4  ;;  %p256_p0 = scmp.ne.s32.totalorder %s417_s0, %s255_s16  ;;  %s17_s13 = int_to_ptr.vmem [resolvable:$true] %s16_s13 }
   0x4   :  { %p259_p1 = scmp.lt.u32.totalorder %s255_s16, %s417_s0 }
   0x6   :  { %p261_p2 = pnand %p259_p1, %p256_p0 }
   0x8   :  { %264 = shalt.err (!%p261_p2)
}
   0x9   :  { %s265_s21 = scalar_lea.vmem %s17_s13, 512  ;;  %p270_p4 = scmp.lt.s32.totalorder %s17_s13, %s17_s13 }
   0xa   :  { %p266_p3 = scmp.ne.s32.totalorder %s17_s13, %s265_s21  ;;  %p271_p5 = scmp.lt.s32.totalorder %s265_s21, %s265_s21 }
   0xc   :  { %p272_p6 = por %p271_p5, %p270_p4 }
   0xe   :  { %p273_p7 = pnand %p272_p6, %p266_p3 }
  0x10   :  { %276 = shalt.err (!%p273_p7)
}
  0x11   :  { %s328_s22 = smov 128   ;;  %s329_s23 = smov 8  }
  0x12   :  { %22 = dma.hbm_to_vmem [thread:$0]  %s417_s0, 512, %s17_s13, [#allocation4], %s328_s22, %s328_s22, %s329_s23  }
  0x13   :  { %s330_s26 = smov [#allocation6]   ;;  %s277_s30 = scalar_lea.hbm %s418_s1, 512 }
  0x14   :  { %s28_s27 = sshll.u32 %s330_s26, 4  ;;  %p278_p8 = scmp.ne.s32.totalorder %s418_s1, %s277_s30  ;;  %s29_s27 = int_to_ptr.vmem [resolvable:$true] %s28_s27 }
  0x15   :  { %p281_p9 = scmp.lt.u32.totalorder %s277_s30, %s418_s1 }
  0x17   :  { %p283_p10 = pnand %p281_p9, %p278_p8 }
  0x19   :  { %286 = shalt.err (!%p283_p10)
}
  0x1a   :  { %s287_s8 = scalar_lea.vmem %s29_s27, 512  ;;  %p292_p12 = scmp.lt.s32.totalorder %s29_s27, %s29_s27 }
  0x1b   :  { %p288_p11 = scmp.ne.s32.totalorder %s29_s27, %s287_s8  ;;  %p293_p13 = scmp.lt.s32.totalorder %s287_s8, %s287_s8 }
  0x1d   :  { %p294_p0 = por %p293_p13, %p292_p12 }
  0x1f   :  { %p295_p1 = pnand %p294_p0, %p288_p11 }
  0x21   :  { %298 = shalt.err (!%p295_p1)
}
  0x22   :  { %34 = dma.hbm_to_vmem [thread:$0]  %s418_s1, 512, %s29_s27, [#allocation7], %s328_s22, %s328_s22, %s329_s23  }
  0x23   :  { %321 = dma.done.wait [#allocation4], 512  }
  0x24   :  { %322 = vsyncadd [#allocation4], 4294966784 }
  0x25   :  { %323 = dma.done.wait [#allocation7], 512  }
  0x26   :  { %324 = vsyncadd [#allocation7], 4294966784  ;;  %vm47_vm0 = vcmask 261120   ;;  %v331_v0 = vmov 0.0   ;;  %v60_v1 = vld [vmem:[#allocation6] sm:$0xff]  ;;  %v61_v2 = vld [vmem:[#allocation6 + $0x8] sm:$0xff] }
  0x27   :  { %49 = vst.msk [vmem:[#allocation2 + $0x8] sm:$0xff] %vm47_vm0, %v331_v0  ;;  %48 = vst.msk [vmem:[#allocation2] sm:$0xff] %vm47_vm0, %v331_v0  ;;  %v62_v3 = vld [vmem:[#allocation6 + $0x10] sm:$0xff]  ;;  %v237_v4 = vpack.c.bf16 %v61_v2, %v60_v1  ;;  %v63_v5 = vld [vmem:[#allocation6 + $0x18] sm:$0xff]  ;;  %s332_s11 = smov [#allocation8]  }
  0x28   :  { %50 = vst.msk [vmem:[#allocation2 + $0x10] sm:$0xff] %vm47_vm0, %v331_v0  ;;  %51 = vst.msk [vmem:[#allocation2 + $0x18] sm:$0xff] %vm47_vm0, %v331_v0  ;;  %v56_v6 = vld [vmem:[#allocation3] sm:$0xff]  ;;  %v58_v7 = vld [vmem:[#allocation3 + $0x10] sm:$0xff]  ;;  %v241_v8 = vpack.c.bf16 %v63_v5, %v62_v3  ;;  %s197_s12 = sshll.u32 %s332_s11, 4  ;;  %s198_s12 = int_to_ptr.vmem [resolvable:$true] %s197_s12 }
  0x29   :  { %231 = vmatprep.mubr.msk.f32.mxu0 %vm47_vm0, %v56_v6  ;;  %234 = vmatprep.mubr.msk.f32.mxu1 %vm47_vm0, %v58_v7  ;;  %v57_v9 = vld [vmem:[#allocation3 + $0x8] sm:$0xff]  ;;  %v59_v10 = vld [vmem:[#allocation3 + $0x18] sm:$0xff]  ;;  %v214_v23 = vld [vmem:[%s419_s2] ss:$0 sm:$0xff]  ;;  %s299_s2 = scalar_lea.vmem %s198_s12, 512  ;;  %p304_p3 = scmp.lt.s32.totalorder %s198_s12, %s198_s12 }
  0x2a   :  { %238 = vmatprep.subr.bf16.mxu0 %v237_v4  ;;  %245 = vmatprep.subr.bf16.mxu1 %v237_v4  ;;  %p300_p2 = scmp.ne.s32.totalorder %s198_s12, %s299_s2  ;;  %p305_p4 = scmp.lt.s32.totalorder %s299_s2, %s299_s2 }
  0x2b   :  { %240 = vmatpush3.bf16.msra.mxu0 %v237_v4  ;;  %247 = vmatpush3.bf16.msra.mxu1 %v237_v4 }
  0x2c   :  { %242 = vmatprep.subr.bf16.mxu0 %v241_v8  ;;  %246 = vmatprep.subr.bf16.mxu1 %v241_v8  ;;  %p306_p5 = por %p305_p4, %p304_p3 }
  0x2e   :  { %v53_v11 = vld [vmem:[#allocation2 + $0x8] sm:$0xff]  ;;  %v52_v13 = vld [vmem:[#allocation2] sm:$0xff]  ;;  %p307_p6 = pnand %p306_p5, %p300_p2 }
  0x2f   :  { %244 = vmatpush3.bf16.msra.mxu0 %v241_v8  ;;  %248 = vmatpush3.bf16.msra.mxu1 %v241_v8  ;;  %v55_v12 = vld [vmem:[#allocation2 + $0x18] sm:$0xff]  ;;  %v54_v14 = vld [vmem:[#allocation2 + $0x10] sm:$0xff] }
  0x32   :  { %232 = vmatmul.mubr.msk.f32.vlgmr.msra.gmra.mrb[0].mxu0 %vm47_vm0, %v57_v9  ;;  %235 = vmatmul.mubr.msk.f32.vlgmr.msra.gmra.mrb[0].mxu1 %vm47_vm0, %v59_v10 }
 0x105   :  { %v233_v15 = vpop.f32.mrb[0].mxu0  ;;  %v236_v16 = vpop.f32.mrb[0].mxu1 }
 0x106   :  { %v163_v17 = vadd.f32 %v233_v15, %v53_v11  ;;  %v165_v18 = vadd.f32 %v236_v16, %v55_v12  ;;  %v143_v19 = vpop.f32.mrb[1].mxu0  ;;  %v153_v20 = vpop.f32.mrb[1].mxu1 }
 0x107   :  { %v162_v21 = vadd.f32 %v143_v19, %v52_v13  ;;  %v164_v22 = vadd.f32 %v153_v20, %v54_v14 }
 0x108   :  { %167 = vst.msk [vmem:[#allocation2 + $0x8] sm:$0xff] %vm47_vm0, %v163_v17  ;;  %169 = vst.msk [vmem:[#allocation2 + $0x18] sm:$0xff] %vm47_vm0, %v165_v18 }
 0x109   :  { %166 = vst.msk [vmem:[#allocation2] sm:$0xff] %vm47_vm0, %v162_v21  ;;  %168 = vst.msk [vmem:[#allocation2 + $0x10] sm:$0xff] %vm47_vm0, %v164_v22 }
 0x10f   :  { %v174_v24 = vld [vmem:[#allocation2 + $0x8] sm:$0xff]  ;;  %v176_v25 = vld [vmem:[#allocation2 + $0x18] sm:$0xff] }
 0x110   :  { %v173_v26 = vld [vmem:[#allocation2] sm:$0xff]  ;;  %v175_v27 = vld [vmem:[#allocation2 + $0x10] sm:$0xff]  ;;  %v185_v28 = vadd.f32 %v214_v23, %v174_v24  ;;  %v187_v29 = vadd.f32 %v214_v23, %v176_v25 }
 0x111   :  { %v184_v30 = vadd.f32 %v214_v23, %v173_v26  ;;  %v186_v31 = vadd.f32 %v214_v23, %v175_v27 }
 0x112   :  { %189 = vst.msk [vmem:[#allocation8 + $0x8] sm:$0xff] %vm47_vm0, %v185_v28  ;;  %191 = vst.msk [vmem:[#allocation8 + $0x18] sm:$0xff] %vm47_vm0, %v187_v29 }
 0x113   :  { %188 = vst.msk [vmem:[#allocation8] sm:$0xff] %vm47_vm0, %v184_v30  ;;  %190 = vst.msk [vmem:[#allocation8 + $0x10] sm:$0xff] %vm47_vm0, %v186_v31 }
 0x114   :  { %310 = shalt.err (!%p307_p6)
}
 0x115   :  { %s311_s15 = scalar_lea.hbm %s420_s3, 512 }
 0x116   :  { %p312_p7 = scmp.ne.s32.totalorder %s420_s3, %s311_s15  ;;  %p315_p8 = scmp.lt.u32.totalorder %s311_s15, %s420_s3 }
 0x118   :  { %p317_p9 = pnand %p315_p8, %p312_p7 }
 0x11a   :  { %320 = shalt.err (!%p317_p9)
}
 0x11b   :  { %203 = dma.vmem_to_hbm [thread:$0]  %s198_s12, 512, %s420_s3, [#allocation5], %s328_s22, %s328_s22, %s329_s23  }
 0x11c   :  { %325 = dma.done.wait [#allocation5], 512  }
 0x11d   :  { %326 = vsyncadd [#allocation5], 4294966784 }
 0x11e   :  { %207 = vsyncpa [#allocation4], 1 }
 0x11f   :  { %208 = vsyncpa [#allocation7], 1 }
 0x120   :  { %209 = vsyncpa [#allocation5], 1 }

</bundles_post_ra>
